<compile_context>
chip_gen: v7x
topology: tpu7x:2x2x1
jax: 0.10.0
libtpu: 0.0.40
codegen_flags: <defaults>
</compile_context>

<pallas_src>
import functools

import jax
import jax.numpy as jnp
from jax.experimental import pallas as pl
from jax.experimental.pallas import tpu as pltpu


def _maxpool_kernel(x_ref, o_ref, *scratch, kernel_size, stride, padding,
                    h_out, w_out, pad_val):
    """x_ref: (tc, h, w) NCHW channel block; o_ref: (tc, h_out, w_out)."""
    k = kernel_size

    if padding > 0:
        # Fused pad: fill a VMEM scratch with the dtype minimum and write the
        # interior. Pure VMEM traffic -- no extra HBM round trip for padding.
        pad_ref = scratch[0]
        pad_ref[...] = jnp.full(pad_ref.shape, pad_val, dtype=pad_ref.dtype)
        pad_ref[:, padding:padding + x_ref.shape[1],
                padding:padding + x_ref.shape[2]] = x_ref[...]
        src = pad_ref
    else:
        src = x_ref

    # Pass 1 (vertical, over kh): sublane-offset ref slices -> plain VMEM loads.
    def row_tap(kh):
        if stride == 1:
            return src[:, pl.ds(kh, h_out), :]
        return src[:, pl.ds(kh, h_out, stride=stride), :]

    vmax = row_tap(0)
    for kh in range(1, k):
        vmax = jnp.maximum(vmax, row_tap(kh))            # (tc, h_out, wp)

    # Pass 2 (horizontal, over kw) on the smaller intermediate. Separable
    # formulation: 2*(k-1) maxes instead of k*k-1.  Lane-axis shifts ride the
    # XLU, which is a free slot for this memory-bound kernel.
    if stride == 1:
        out = vmax[:, :, 0:w_out]
        for kw in range(1, k):
            out = jnp.maximum(out, vmax[:, :, kw:kw + w_out])
    else:
        # stride > 1 is not the module's hot default (stride=1); correct but untuned.
        span = (w_out - 1) * stride + 1
        out = vmax[:, :, 0:span:stride]
        for kw in range(1, k):
            out = jnp.maximum(out, vmax[:, :, kw:kw + span:stride])

    o_ref[...] = out.astype(o_ref.dtype)


def _cdiv(a, b):
    return -(-a // b)


def _vmem_limit_bytes():
    # Generation-aware limit: ~5/8 of physical VMEM (80 MiB on v5e/v6e's
    # 128 MiB, 40 MiB on v7x's 64 MiB), capped at 100 MiB.
    try:
        cap = int(pltpu.get_tpu_info().vmem_capacity_bytes)
    except Exception:
        cap = 64 * 1024 * 1024
    return int(min(100 * 1024 * 1024, (cap * 5) // 8))


def q_max_pooling_2d(x, kernel_size=3, stride=1, padding=0):
    """Forward pass of QMaxPooling2d (qi=False): max_pool2d on NCHW input."""
    # TODO(synk): qi=True path (running min/max calibration + fake-quantize) is
    # stateful calibration logic, not the hot-path op; only the default qi=False
    # forward (== F.max_pool2d) is implemented here.
    if padding > kernel_size // 2:
        raise ValueError("padding should be at most half of the kernel size")
    n, c, h, w = x.shape
    hp = h + 2 * padding
    wp = w + 2 * padding
    h_out = (hp - kernel_size) // stride + 1
    w_out = (wp - kernel_size) // stride + 1
    c_total = n * c
    itemsize = jnp.dtype(x.dtype).itemsize

    # Dtype minimum (not -inf) so integer/quantized dtypes stay valid.
    if jnp.issubdtype(x.dtype, jnp.floating):
        pad_val = float(jnp.finfo(x.dtype).min)
    else:
        pad_val = int(jnp.iinfo(x.dtype).min)

    # NCHW stays put: (N, C, H, W) -> (N*C, H, W) is a free reshape, and each
    # channel block is contiguous in HBM (fully contiguous DMAs, no transpose).
    x_flat = x.reshape(c_total, h, w)

    vmem_limit = _vmem_limit_bytes()
    budget = vmem_limit - 4 * 1024 * 1024   # headroom for compiler scratch

    # Per-channel VMEM bytes: double-buffered in/out blocks + in-kernel pad
    # scratch + the materialized vertical-max intermediate.
    per_channel = (
        2 * h * w
        + (hp * wp if padding > 0 else 0)
        + h_out * wp
        + 2 * h_out * w_out
    ) * itemsize

    tc_max = budget // per_channel
    if tc_max < 1:
        # TODO(synk): for huge spatial planes, tile H with a (k-1)-row halo via
        # manual make_async_copy instead of failing here.
        raise NotImplementedError("spatial plane too large for a single VMEM block")

    # >= 2 grid steps whenever possible so megacore (v7x, 2 TCs) shards the axis.
    min_blocks = 2 if c_total >= 2 else 1
    num_blocks = max(min_blocks, _cdiv(c_total, tc_max))
    tc = _cdiv(c_total, num_blocks)
    num_blocks = _cdiv(c_total, tc)

    kernel = functools.partial(
        _maxpool_kernel,
        kernel_size=kernel_size,
        stride=stride,
        padding=padding,
        h_out=h_out,
        w_out=w_out,
        pad_val=pad_val,
    )

    scratch_shapes = []
    if padding > 0:
        scratch_shapes.append(pltpu.VMEM((tc, hp, wp), x.dtype))

    in_bytes = h * w * c_total * itemsize
    out_bytes = h_out * w_out * c_total * itemsize
    cost = pl.CostEstimate(
        flops=(kernel_size * kernel_size - 1) * c_total * h_out * w_out,
        transcendentals=0,
        bytes_accessed=in_bytes + out_bytes,
    )

    # NOTE: W sits on the 128-lane axis; for tiny feature maps (W < 128) stores
    # are masked.  That is a perf-only caveat of keeping NCHW in place, which
    # wins overall for this HBM-bound op (no wrapper transposes, contiguous DMA).
    out_flat = pl.pallas_call(
        kernel,
        out_shape=jax.ShapeDtypeStruct((c_total, h_out, w_out), x.dtype),
        grid_spec=pltpu.PrefetchScalarGridSpec(
            num_scalar_prefetch=0,
            grid=(num_blocks,),
            in_specs=[pl.BlockSpec((tc, h, w), lambda i: (i, 0, 0))],
            out_specs=pl.BlockSpec((tc, h_out, w_out), lambda i: (i, 0, 0)),
            scratch_shapes=scratch_shapes,
        ),
        compiler_params=pltpu.CompilerParams(
            dimension_semantics=("parallel",),
            vmem_limit_bytes=vmem_limit,
        ),
        cost_estimate=cost,
    )(x_flat)

    # Metadata-only reshape back to NCHW.
    return out_flat.reshape(n, c, h_out, w_out)


def _reference_maxpool(x, kernel_size=3, stride=1, padding=0):
    # Pure-JAX reference (matches F.max_pool2d semantics for these params).
    if jnp.issubdtype(x.dtype, jnp.floating):
        init = jnp.finfo(x.dtype).min
    else:
        init = jnp.iinfo(x.dtype).min
    init = jnp.asarray(init, dtype=x.dtype)
    if padding > 0:
        x = jnp.pad(
            x,
            ((0, 0), (0, 0), (padding, padding), (padding, padding)),
            constant_values=init,
        )
    return jax.lax.reduce_window(
        x,
        init,
        jax.lax.max,
        window_dimensions=(1, 1, kernel_size, kernel_size),
        window_strides=(1, 1, stride, stride),
        padding="VALID",
    )


if __name__ == "__main__":
    key = jax.random.PRNGKey(0)
    # Small NCHW input consistent with the module's conv-style usage.
    x = jax.random.normal(key, (2, 4, 16, 16), dtype=jnp.float32)

    # Default module config: kernel_size=3, stride=1, padding=0.
    out = q_max_pooling_2d(x, kernel_size=3, stride=1, padding=0)
    out = jax.block_until_ready(out)
    ref = _reference_maxpool(x, kernel_size=3, stride=1, padding=0)
    assert out.shape == (2, 4, 14, 14), out.shape
    assert jnp.allclose(out, ref), "mismatch vs reference max_pool2d (padding=0)"

    # Fused in-kernel padding path.
    out_p = q_max_pooling_2d(x, kernel_size=3, stride=1, padding=1)
    out_p = jax.block_until_ready(out_p)
    ref_p = _reference_maxpool(x, kernel_size=3, stride=1, padding=1)
    assert out_p.shape == (2, 4, 16, 16), out_p.shape
    assert jnp.allclose(out_p, ref_p), "mismatch vs reference max_pool2d (padding=1)"

    print("KERNEL_OK")
</pallas_src>

<mosaic_0001>
module attributes {stable_mosaic.version = 11 : i64} {
  func.func @_maxpool_kernel(%arg0: i32, %arg1: memref<4x16x16xf32, #tpu.memory_space<vmem>>, %arg2: memref<4x14x14xf32, #tpu.memory_space<vmem>>) attributes {dimension_semantics = [#tpu.dimension_semantics<parallel>], iteration_bounds = array<i64: 2>, scalar_prefetch = 0 : i64, scratch_operands = 0 : i64, tpu.core_type = #tpu.core_type<tc>, window_params = [{transform_indices = @transform_0, window_bounds = array<i64: 4, 16, 16>}, {transform_indices = @transform_1, window_bounds = array<i64: 4, 14, 14>}]} {
    %c0 = arith.constant 0 : index
    %c0_0 = arith.constant 0 : index
    %c0_1 = arith.constant 0 : index
    %0 = vector.load %arg1[%c0, %c0_0, %c0_1] : memref<4x16x16xf32, #tpu.memory_space<vmem>>, vector<4x14x16xf32>
    %c0_2 = arith.constant 0 : index
    %c1 = arith.constant 1 : index
    %c0_3 = arith.constant 0 : index
    %1 = vector.load %arg1[%c0_2, %c1, %c0_3] : memref<4x16x16xf32, #tpu.memory_space<vmem>>, vector<4x14x16xf32>
    %2 = arith.maximumf %0, %1 : vector<4x14x16xf32>
    %c0_4 = arith.constant 0 : index
    %c2 = arith.constant 2 : index
    %c0_5 = arith.constant 0 : index
    %3 = vector.load %arg1[%c0_4, %c2, %c0_5] : memref<4x16x16xf32, #tpu.memory_space<vmem>>, vector<4x14x16xf32>
    %4 = arith.maximumf %2, %3 : vector<4x14x16xf32>
    %5 = vector.extract_strided_slice %4 {offsets = [0, 0, 0], sizes = [4, 14, 14], strides = [1, 1, 1]} : vector<4x14x16xf32> to vector<4x14x14xf32>
    %6 = vector.extract_strided_slice %4 {offsets = [0, 0, 1], sizes = [4, 14, 14], strides = [1, 1, 1]} : vector<4x14x16xf32> to vector<4x14x14xf32>
    %7 = arith.maximumf %5, %6 : vector<4x14x14xf32>
    %8 = vector.extract_strided_slice %4 {offsets = [0, 0, 2], sizes = [4, 14, 14], strides = [1, 1, 1]} : vector<4x14x16xf32> to vector<4x14x14xf32>
    %9 = arith.maximumf %7, %8 : vector<4x14x14xf32>
    %c0_6 = arith.constant 0 : index
    %c0_7 = arith.constant 0 : index
    %c0_8 = arith.constant 0 : index
    %10 = vector.load %arg2[%c0_6, %c0_7, %c0_8] : memref<4x14x14xf32, #tpu.memory_space<vmem>>, vector<4x14x14xf32>
    tpu.vector_store %arg2[%c0_6, %c0_7, %c0_8], %9 {strides = array<i32>} : memref<4x14x14xf32, #tpu.memory_space<vmem>>, vector<4x14x14xf32>,
    return
  }
  func.func @transform_0(%arg0: i32) -> (i32, i32, i32) {
    %c0_i32 = arith.constant 0 : i32
    %c0_i32_0 = arith.constant 0 : i32
    %c0_i32_1 = arith.constant 0 : i32
    return %arg0, %c0_i32, %c0_i32_0 : i32, i32, i32
  }
  func.func @transform_1(%arg0: i32) -> (i32, i32, i32) {
    %c0_i32 = arith.constant 0 : i32
    %c0_i32_0 = arith.constant 0 : i32
    %c0_i32_1 = arith.constant 0 : i32
    return %arg0, %c0_i32, %c0_i32_0 : i32, i32, i32
  }
}

</mosaic_0001>

<bundles_post_ra>
// kernel: tpu_custom_call.1
= control target key start
LH: loop header
LB: loop body
LE: loop exit
PB: predicated region body
PF: predicated region fallthrough
CT: control target
= control target key end

     0   :  { %6 = vsyncpa [#allocation3], 0  ;;  %s644_s0 = inlined_call_operand.hbm [shape: f32[8,16,16], index: 0, kind: input, shape index: {}]   ;;  %s645_s1 = inlined_call_operand.vmem [shape: f32[8,14,14], index: 1, kind: output, shape index: {}]  }
   0x1   :  { %8 = vsyncpa [#allocation3 + $0x1], 0  ;;  %s475_s6 = smov 0   ;;  %s477_s7 = smov 0  }
   0x2   :  { %s479_s8 = smov 0   ;;  %s481_s9 = smov 0  }
   0x3 LB: > { %s333_s10 = sadd.s32 4294967295, %s458_s9   ;;  %s495_s11 = sadd.s32 1, %s458_s9   ;;  %s458_s9 = sphi %s481_s9, %s652_s9   ;;  %s454_s8 = sphi %s479_s8, %s651_s8   ;;  %s450_s7 = sphi %s477_s7, %s650_s7   ;;  %s446_s6 = sphi %s475_s6, %s649_s6  }
   0x4   : > { %s18_s12 = ssub.s32 %s458_s9, %s495_s11  ;;  %s21_s13 = sadd.s32 1, %s454_s8 }
   0x5   : > { %p19_p0 = scmp.eq.s32.totalorder %s18_s12, 0  ;;  %p28_p1 = scmp.ne.s32.totalorder %s454_s8, %s450_s7 }
   0x6   : > { %p29_p2 = scmp.eq.s32.totalorder %s458_s9, 0  ;;  %p34_p3 = scmp.ne.s32.totalorder %s450_s7, %s446_s6 }
   0x7   : > { %s505_s14 = scalar_select %p19_p0, %s454_s8, %s21_s13  }
   0x8   : > { %p30_p4 = por %p29_p2, %p28_p1  ;;  %p35_p5 = scmp.eq.s32.totalorder %s333_s10, 0 }
   0x9   : > { %p357_p6 = scmp.lt.s32.totalorder %s458_s9, 2  ;;  %s84_s16 = sand.u32 1, %s454_s8  }
   0xa   : > { %p510_p7 = por %p35_p5, %p34_p3  ;;  %s337_s17 = sshll.u32 %s84_s16, 6 }
   0xb   : > { %s349_s18 = sshll.u32 %s458_s9, 10  ;;  %s88_s22 = scalar_lea.vmem [#allocation2], %s337_s17 }
   0xc   : > { %s519_s21 = scalar_lea.hbm %s644_s0, %s349_s18  ;;  %s96_s23 = sshll.u32 %s88_s22, 4  ;;  %s521_s23 = int_to_ptr.vmem [resolvable:$true] %s96_s23 }
   0xd   : > { %p523_p8 = pnand %p357_p6, %p30_p4  ;;  %s528_s25 = scalar_lea.sflag [#allocation3], %s84_s16 }
   0xe   : > { %s394_s26 = scalar_lea.hbm %s519_s21, 1024  ;;  %s399_s29 = scalar_lea.hbm %s644_s0, 2048 }
   0xf   : > { %p395_p10 = scmp.ne.s32.totalorder %s519_s21, %s394_s26  ;;  %p396_p11 = pneg %p523_p8 }
  0x10   : > { %p400_p0 = scmp.lt.u32.totalorder %s519_s21, %s644_s0  ;;  %p401_p1 = scmp.lt.u32.totalorder %s399_s29, %s394_s26 }
  0x11   : > { %p397_p12 = pnand %p396_p11, %p395_p10  ;;  %p403_p3 = scmp.lt.u32.totalorder %s394_s26, %s519_s21 }
  0x12   : > { %p402_p2 = por %p401_p1, %p400_p0 }
  0x13   : > { %p398_p13 = pneg %p397_p12 }
  0x14   : > { %p404_p4 = por %p403_p3, %p402_p2 }
  0x16   : > { %p405_p5 = pnand %p404_p4, %p398_p13 }
  0x18   : > { %408 = shalt.err (!%p405_p5)
}
  0x19   : > { %s409_s3 = scalar_lea.vmem %s521_s23, 1024  ;;  %s460_s4 = smov [#allocation2]  }
  0x1a   : > { %p410_p6 = scmp.ne.s32.totalorder %s521_s23, %s409_s3  ;;  %s414_s5 = sshll.u32 %s460_s4, 4  ;;  %s415_s5 = int_to_ptr.vmem [resolvable:$false] %s414_s5 }
  0x1b   : > { %s416_s6 = scalar_lea.vmem %s415_s5, 2048  ;;  %p417_p9 = scmp.lt.s32.totalorder %s521_s23, %s415_s5 }
  0x1c   : > { %p412_p10 = pnand %p410_p6, %p396_p11  ;;  %p418_p0 = scmp.lt.s32.totalorder %s416_s6, %s409_s3 }
  0x1e   : > { %p413_p12 = pneg %p412_p10  ;;  %p419_p1 = por %p418_p0, %p417_p9 }
  0x20   : > { %p420_p2 = pnand %p419_p1, %p413_p12 }
  0x22   : > { %423 = shalt.err (!%p420_p2)
}
  0x23   : > { %s461_s12 = smov 128   ;;  %s462_s13 = smov 8  }
  0x24   : > { %356 = dma.hbm_to_vmem [thread:$0]  (!%p523_p8), %s519_s21, 1024, %s521_s23, %s528_s25, %s461_s12, %s461_s12, %s462_s13  }
  0x25   : > { %p104_p11 = scmp.lt.s32.totalorder %s458_s9, 3  ;;  %p648_p13 = scmp.ge.s32.totalorder %s458_s9, 1 }
  0x27   : > { %p105_p3 = pnand %p648_p13, %p104_p11 }
  0x28   : > { %s110_s16 = sand.u32 (!%p105_p3), 1, %s450_s7  }
  0x29   : > { %108 = sbr.rel (%p105_p3) target bundleno = 202 (0xca), region = 24  ;;  %s342_s17 = sshll.u32 (!%p105_p3), %s110_s16, 6 }
  0x2a   : > { %s111_s18 = scalar_lea.sflag (!%p105_p3), [#allocation3], %s110_s16  ;;  %s560_s19 = scalar_lea.vmem (!%p105_p3), [#allocation2], %s342_s17 }
  0x30   : > { %441 = dma.done.wait (%p510_p7), %s111_s18, 1024  }
  0x31   : > { %443 = vsyncadd (%p510_p7), %s111_s18, 4294966272  ;;  %v144_v0 = vld [vmem:[%s560_s19 + $0x10] sm:$0xff]  ;;  %v142_v4 = vld [vmem:[%s560_s19] sm:$0xff]  ;;  %s463_s15 = smov 127   ;;  %s464_s20 = smov 126   ;;  %vm256_vm0 = vcmask 111616  }
  0x32   : > { %v152_v1 = vld [vmem:[%s560_s19 + $0x11] sm:$0xff]  ;;  %v150_v5 = vld [vmem:[%s560_s19 + $0x1] sm:$0xff]  ;;  %v153_v9 = vld [vmem:[%s560_s19 + $0x19] sm:$0x3f]  ;;  %s343_s21 = sshll.u32 %s333_s10, 2  ;;  %vm254_vm1 = vcmask 113664  }
  0x33   : > { %v168_v2 = vld [vmem:[%s560_s19 + $0x12] sm:$0xff]  ;;  %v160_v3 = vmax.f32 %v144_v0, %v152_v1  ;;  %v166_v6 = vld [vmem:[%s560_s19 + $0x2] sm:$0xff]  ;;  %v158_v7 = vmax.f32 %v142_v4, %v150_v5  ;;  %v169_v10 = vld [vmem:[%s560_s19 + $0x1a] sm:$0x3f]  ;;  %p136_p7 = scmp.lt.s32.totalorder %s343_s21, 7 }
  0x34   : > { %v145_v8 = vld [vmem:[%s560_s19 + $0x18] sm:$0x3f]  ;;  %v143_v13 = vld [vmem:[%s560_s19 + $0x8] sm:$0x3f]  ;;  %v146_v22 = vld [vmem:[%s560_s19 + $0x20] sm:$0xff] }
  0x35   : > { %v575_v11 = vmax.f32 %v160_v3, %v168_v2  ;;  %v161_v12 = vmax.f32 %v145_v8, %v153_v9  ;;  %v151_v14 = vld [vmem:[%s560_s19 + $0x9] sm:$0x3f]  ;;  %v174_v16 = vmax.f32 %v158_v7, %v166_v6  ;;  %v154_v23 = vld [vmem:[%s560_s19 + $0x21] sm:$0xff]  ;;  %v149_v30 = vld [vmem:[%s560_s19 + $0x38] sm:$0x3f]  ;;  %s654_s21 = smov (!%p136_p7, %s343_s21), 7 }
  0x36   : > { %v167_v15 = vld [vmem:[%s560_s19 + $0xa] sm:$0x3f]  ;;  %v159_v17 = vmax.f32 %v143_v13, %v151_v14  ;;  %v162_v26 = vmax.f32 %v146_v22, %v154_v23  ;;  %v170_v27 = vld [vmem:[%s560_s19 + $0x22] sm:$0xff]  ;;  %v157_v31 = vld [vmem:[%s560_s19 + $0x39] sm:$0x3f]  ;;  %s350_s22 = sshll.u32 %s654_s21, 4 }
  0x37   : > { %v147_v18 = vld [vmem:[%s560_s19 + $0x28] sm:$0x3f]  ;;  %194 = vrot.lane.b32.xlu1 %v575_v11, %s463_s15  ;;  %v584_v20 = vmax.f32 %v161_v12, %v169_v10  ;;  %190 = vrot.lane.b32.xlu0 %v174_v16, %s463_s15  ;;  %v148_v32 = vld [vmem:[%s560_s19 + $0x30] sm:$0xff]  ;;  %v165_v34 = vmax.f32 %v149_v30, %v157_v31  ;;  %s611_s25 = scalar_lea.vmem %s645_s1, %s350_s22 }
  0x38   : > { %v155_v19 = vld [vmem:[%s560_s19 + $0x29] sm:$0x3f]  ;;  %v175_v24 = vmax.f32 %v159_v17, %v167_v15  ;;  %v178_v29 = vmax.f32 %v162_v26, %v170_v27  ;;  %v156_v33 = vld [vmem:[%s560_s19 + $0x31] sm:$0xff]  ;;  %v173_v35 = vld [vmem:[%s560_s19 + $0x3a] sm:$0x3f] }
  0x39   : > { %v163_v21 = vmax.f32 %v147_v18, %v155_v19  ;;  %v171_v25 = vld [vmem:[%s560_s19 + $0x2a] sm:$0x3f]  ;;  %v164_v36 = vmax.f32 %v148_v32, %v156_v33  ;;  %v172_v37 = vld [vmem:[%s560_s19 + $0x32] sm:$0xff]  ;;  %v181_v38 = vmax.f32 %v165_v34, %v173_v35 }
  0x3b   : > { %196 = vrot.lane.b32.xlu1 %v584_v20, %s463_s15  ;;  %v179_v28 = vmax.f32 %v163_v21, %v171_v25  ;;  %192 = vrot.lane.b32.xlu0 %v175_v24, %s463_s15  ;;  %v180_v39 = vmax.f32 %v164_v36, %v172_v37 }
  0x3f   : > { %200 = vrot.lane.b32.xlu1 %v179_v28, %s463_s15  ;;  %198 = vrot.lane.b32.xlu0 %v178_v29, %s463_s15 }
  0x43   : > { %224 = vrot.lane.b32.xlu1 %v175_v24, %s464_s20  ;;  %222 = vrot.lane.b32.xlu0 %v174_v16, %s464_s20 }
  0x47   : > { %204 = vrot.lane.b32.xlu1 %v181_v38, %s463_s15  ;;  %202 = vrot.lane.b32.xlu0 %v180_v39, %s463_s15 }
  0x4b   : > { %228 = vrot.lane.b32.xlu1 %v584_v20, %s464_s20  ;;  %226 = vrot.lane.b32.xlu0 %v575_v11, %s464_s20 }
  0x4f   : > { %232 = vrot.lane.b32.xlu1 %v179_v28, %s464_s20  ;;  %230 = vrot.lane.b32.xlu0 %v178_v29, %s464_s20 }
  0x53   : > { %236 = vrot.lane.b32.xlu1 %v181_v38, %s464_s20  ;;  %234 = vrot.lane.b32.xlu0 %v180_v39, %s464_s20 }
  0xa9   : > { %v195_v40 = vpop.permute.xlu1 %194  ;;  %v191_v41 = vpop.permute.xlu0 %190 }
  0xaa   : > { %v214_v47 = vmax.f32 %v174_v16, %v191_v41  ;;  %v216_v55 = vmax.f32 %v575_v11, %v195_v40 }
  0xad   : > { %v197_v42 = vpop.permute.xlu1 %196  ;;  %v193_v43 = vpop.permute.xlu0 %192 }
  0xae   : > { %v215_v46 = vmax.f32 %v175_v24, %v193_v43  ;;  %v217_v54 = vmax.f32 %v584_v20, %v197_v42 }
  0xb1   : > { %v201_v44 = vpop.permute.xlu1 %200  ;;  %v199_v45 = vpop.permute.xlu0 %198 }
  0xb2   : > { %v219_v60 = vmax.f32 %v179_v28, %v201_v44  ;;  %v218_v61 = vmax.f32 %v178_v29, %v199_v45 }
  0xb5   : > { %v225_v48 = vpop.permute.xlu1 %224  ;;  %v223_v50 = vpop.permute.xlu0 %222 }
  0xb6   : > { %v247_v49 = vmax.f32 %v215_v46, %v225_v48  ;;  %v246_v51 = vmax.f32 %v214_v47, %v223_v50 }
  0xb8   : > { %257 = vst.msk [vmem:[%s611_s25 + $0x8] sm:$0x3f] %vm256_vm0, %v247_v49 }
  0xb9   : > { %255 = vst.msk [vmem:[%s611_s25] sm:$0xff] %vm254_vm1, %v246_v51  ;;  %v205_v52 = vpop.permute.xlu1 %204  ;;  %v203_v53 = vpop.permute.xlu0 %202 }
  0xba   : > { %v221_v2 = vmax.f32 %v181_v38, %v205_v52  ;;  %v220_v3 = vmax.f32 %v180_v39, %v203_v53 }
  0xbd   : > { %v229_v56 = vpop.permute.xlu1 %228  ;;  %v227_v58 = vpop.permute.xlu0 %226 }
  0xbe   : > { %v249_v57 = vmax.f32 %v217_v54, %v229_v56  ;;  %v248_v59 = vmax.f32 %v216_v55, %v227_v58 }
  0xc0   : > { %259 = vst.msk [vmem:[%s611_s25 + $0x18] sm:$0x3f] %vm256_vm0, %v249_v57 }
  0xc1   : > { %258 = vst.msk [vmem:[%s611_s25 + $0x10] sm:$0xff] %vm254_vm1, %v248_v59  ;;  %v233_v62 = vpop.permute.xlu1 %232  ;;  %v231_v0 = vpop.permute.xlu0 %230 }
  0xc2   : > { %v251_v63 = vmax.f32 %v219_v60, %v233_v62  ;;  %v250_v1 = vmax.f32 %v218_v61, %v231_v0 }
  0xc4   : > { %261 = vst.msk [vmem:[%s611_s25 + $0x28] sm:$0x3f] %vm256_vm0, %v251_v63 }
  0xc5   : > { %260 = vst.msk [vmem:[%s611_s25 + $0x20] sm:$0xff] %vm254_vm1, %v250_v1  ;;  %v237_v4 = vpop.permute.xlu1 %236  ;;  %v235_v6 = vpop.permute.xlu0 %234 }
  0xc6   : > { %v253_v5 = vmax.f32 %v221_v2, %v237_v4  ;;  %v252_v7 = vmax.f32 %v220_v3, %v235_v6 }
  0xc8   : > { %263 = vst.msk [vmem:[%s611_s25 + $0x38] sm:$0x3f] %vm256_vm0, %v253_v5 }
  0xc9   : > { %262 = vst.msk [vmem:[%s611_s25 + $0x30] sm:$0xff] %vm254_vm1, %v252_v7 }
  0xca PF: > { %p11_p8 = scmp.ge.s32.totalorder %s495_s11, 4   ;;  %s649_s6 = smov %s450_s7 }
  0xcb   : > { %s650_s7 = smov %s454_s8  ;;  %s651_s8 = smov %s505_s14 }
  0xcc   : > { %s652_s9 = smov %s495_s11  ;;  %13 = sbr.rel (!%p11_p8) target bundleno = 3 (0x3), region = 64 }
  0xd3   :  { %288 = vsyncpa [#allocation3], 1 }
  0xd4   :  { %290 = vsyncpa [#allocation3 + $0x1], 1 }

</bundles_post_ra>
